<compile_context>
chip_gen: v6e
topology: v6e:2x2x1
jax: 0.10.0
libtpu: 0.0.40
codegen_flags: <defaults>
</compile_context>

<pallas_src>
import jax
import jax.numpy as jnp
from jax.experimental import pallas as pl
from jax.experimental.pallas import tpu as pltpu


def _round_up(x, m):
    return ((x + m - 1) // m) * m


def _pad2d(x, rows, cols):
    return jnp.pad(x, ((0, rows - x.shape[0]), (0, cols - x.shape[1])))


def _choose_tile_v(V, tile_v):
    """Lane-dense V tile: multiple of 128, and >=2 tiles when the vocab allows
    it so both v7x TensorCores get work."""
    v128 = _round_up(V, 128)
    tile_v = min(_round_up(tile_v, 128), v128)
    if v128 >= 256 and v128 <= tile_v:
        tile_v = _round_up(v128 // 2, 128)
    return tile_v


def cbow_logits_kernel(bag_ref, w_ref, b_ref, out_ref):
    """One V-tile of the CBOW linear layer.

    bag_ref : (B_pad, D_pad)   bf16  VMEM  (bag-of-words context sum, constant)
    w_ref   : (D_pad, tile_v)  bf16  VMEM  (linear weight tile, pre-transposed)
    b_ref   : (1, tile_v)      f32   VMEM  (bias tile)
    out_ref : (B_pad, tile_v)  f32   VMEM  (logits tile)
    """
    logits = jnp.dot(bag_ref[...], w_ref[...],
                     preferred_element_type=jnp.float32)   # MXU, f32 accum
    out_ref[...] = (logits + b_ref[...]).astype(out_ref.dtype)


def prepare_cbow_params(emb_weight, lin_weight, lin_bias, *, tile_v=1024):
    """One-time weight preprocessing (keep OUT of the per-step forward path).

    emb_weight : (V, D) f32   nn.Embedding.weight
    lin_weight : (V, D) f32   nn.Linear.weight (PyTorch (out, in) layout)
    lin_bias   : (V,)   f32
    """
    V, D = emb_weight.shape
    D_pad = _round_up(D, 128)                 # lane-dense contraction dim
    tile_v = _choose_tile_v(V, tile_v)
    V_pad = _round_up(V, tile_v)

    # bf16 weight storage: MXU-native, halves the dominant HBM traffic of the
    # bandwidth-bound logits matmul.  Zero-padded rows/cols contribute zero.
    w_t = _pad2d(jnp.transpose(lin_weight), D_pad, V_pad).astype(jnp.bfloat16)
    bias = jnp.pad(lin_bias, (0, V_pad - V)).reshape(1, V_pad).astype(jnp.float32)

    return {
        "emb_weight": emb_weight.astype(jnp.float32),   # gather stays f32
        "w_t": w_t,
        "bias": bias,
        "V": V, "D": D, "D_pad": D_pad, "V_pad": V_pad, "tile_v": tile_v,
    }


def cbow_forward(params, ids):
    """CBOW forward: logits = (sum_c Emb[ids[:, c]]) @ W.T + b.

    ids     : (B, C) int32
    returns : (B, V) f32 logits
    """
    B, C = ids.shape
    V, D = params["V"], params["D"]
    D_pad, V_pad, tile_v = params["D_pad"], params["V_pad"], params["tile_v"]
    B_pad = _round_up(B, 8)                   # sublane alignment

    # Embedding gather + context sum in the wrapper (f32, matches the module):
    # tiny O(B*C*D) work, not worth a kernel, and keeps the grid loop a pure
    # streamed matmul.
    bag = jnp.take(params["emb_weight"], ids.astype(jnp.int32), axis=0).sum(axis=1)
    bag = _pad2d(bag, B_pad, D_pad).astype(jnp.bfloat16)   # (B_pad, D_pad)

    grid = (V_pad // tile_v,)

    cost = pl.CostEstimate(
        flops=2 * B_pad * D_pad * V_pad,
        transcendentals=0,
        bytes_accessed=(bag.size * 2 + params["w_t"].size * 2
                        + params["bias"].size * 4 + B_pad * V_pad * 4),
    )

    out = pl.pallas_call(
        cbow_logits_kernel,
        out_shape=jax.ShapeDtypeStruct((B_pad, V_pad), jnp.float32),
        grid_spec=pltpu.PrefetchScalarGridSpec(
            num_scalar_prefetch=0,
            grid=grid,
            in_specs=[
                # Bag-of-words block: small, constant block index (resident).
                pl.BlockSpec((B_pad, D_pad), lambda j: (0, 0)),
                # Linear weight: one (D_pad, tile_v) tile per grid step,
                # double-buffered by the default pipeliner.
                pl.BlockSpec((D_pad, tile_v), lambda j: (0, j)),
                # Bias tile.
                pl.BlockSpec((1, tile_v), lambda j: (0, j)),
            ],
            out_specs=pl.BlockSpec((B_pad, tile_v), lambda j: (0, j)),
        ),
        compiler_params=pltpu.CompilerParams(
            # V tiles are independent -> megacore sharding on v7x.
            dimension_semantics=("parallel",),
            # Default scoped VMEM limit is plenty now that only W tiles
            # (a few MiB double-buffered) live in VMEM.
        ),
        cost_estimate=cost,
    )(bag, params["w_t"], params["bias"])

    return out[:B, :V]


def xavier_uniform(key, shape):
    fan_out, fan_in = shape
    limit = (6.0 / (fan_in + fan_out)) ** 0.5
    return jax.random.uniform(key, shape, jnp.float32, -limit, limit)


if __name__ == "__main__":
    # Small, CBOW-consistent shapes (vocab big enough to exercise >1 V tile).
    vocab_size = 512      # V
    embedding_dim = 32    # D
    batch = 8             # B
    context = 8           # C (context window length)

    key = jax.random.PRNGKey(0)
    k_emb, k_w, k_b, k_ids = jax.random.split(key, 4)

    emb_weight = xavier_uniform(k_emb, (vocab_size, embedding_dim))   # (V, D)
    lin_weight = xavier_uniform(k_w, (vocab_size, embedding_dim))     # (V, D)
    bound = 1.0 / (embedding_dim ** 0.5)
    lin_bias = jax.random.uniform(k_b, (vocab_size,), jnp.float32, -bound, bound)

    ids = jax.random.randint(k_ids, (batch, context), 0, vocab_size, jnp.int32)

    params = prepare_cbow_params(emb_weight, lin_weight, lin_bias)    # once
    out = cbow_forward(params, ids)
    out = jax.block_until_ready(out)
    assert out.shape == (batch, vocab_size)

    hi = jax.lax.Precision.HIGHEST

    # Tight check vs a reference that mimics the kernel's bf16 storage of the
    # linear weight and of the bag-of-words activation.
    embeds_f32 = jnp.take(emb_weight, ids, axis=0).sum(axis=1)
    embeds_bf = embeds_f32.astype(jnp.bfloat16).astype(jnp.float32)
    w_bf = lin_weight.astype(jnp.bfloat16).astype(jnp.float32)
    ref_bf = jnp.dot(embeds_bf, w_bf.T, precision=hi) + lin_bias
    assert jnp.allclose(out, ref_bf, atol=5e-3, rtol=5e-3), \
        float(jnp.max(jnp.abs(out - ref_bf)))

    # Loose check vs the exact f32 PyTorch-module semantics (only deviation:
    # bf16 storage of W and of the context sum fed to the MXU).
    ref_f32 = jnp.dot(embeds_f32, lin_weight.T, precision=hi) + lin_bias
    assert jnp.allclose(out, ref_f32, atol=5e-2, rtol=5e-2)

    print("KERNEL_OK")
</pallas_src>

<mosaic_0001>
module attributes {stable_mosaic.version = 11 : i64} {
  func.func @cbow_logits_kernel(%arg0: i32, %arg1: memref<8x128xbf16, #tpu.memory_space<vmem>>, %arg2: memref<128x256xbf16, #tpu.memory_space<vmem>>, %arg3: memref<1x256xf32, #tpu.memory_space<vmem>>, %arg4: memref<8x256xf32, #tpu.memory_space<vmem>>) attributes {dimension_semantics = [#tpu.dimension_semantics<parallel>], iteration_bounds = array<i64: 2>, scalar_prefetch = 0 : i64, scratch_operands = 0 : i64, tpu.core_type = #tpu.core_type<tc>, window_params = [{pipeline_mode = #tpu.pipeline_mode<synchronous>, transform_indices = @transform_0, window_bounds = array<i64: 8, 128>}, {transform_indices = @transform_1, window_bounds = array<i64: 128, 256>}, {transform_indices = @transform_2, window_bounds = array<i64: 1, 256>}, {transform_indices = @transform_3, window_bounds = array<i64: 8, 256>}]} {
    %c0 = arith.constant 0 : index
    %c0_0 = arith.constant 0 : index
    %0 = vector.load %arg1[%c0, %c0_0] : memref<8x128xbf16, #tpu.memory_space<vmem>>, vector<8x128xbf16>
    %c0_1 = arith.constant 0 : index
    %c0_2 = arith.constant 0 : index
    %1 = vector.load %arg2[%c0_1, %c0_2] : memref<128x256xbf16, #tpu.memory_space<vmem>>, vector<128x256xbf16>
    %cst = arith.constant dense<0.000000e+00> : vector<8x256xf32>
    %2 = tpu.matmul %0, %1, %cst {dimension_numbers = #tpu.dot_dimension_numbers<[1], [0], [0], [1], [0, 0, 1, 1], [], []>} : vector<8x128xbf16>, vector<128x256xbf16>, vector<8x256xf32> -> vector<8x256xf32>
    %c0_3 = arith.constant 0 : index
    %c0_4 = arith.constant 0 : index
    %3 = vector.load %arg3[%c0_3, %c0_4] : memref<1x256xf32, #tpu.memory_space<vmem>>, vector<1x256xf32>
    %4 = vector.broadcast %3 : vector<1x256xf32> to vector<8x256xf32>
    %5 = arith.addf %2, %4 : vector<8x256xf32>
    %c0_5 = arith.constant 0 : index
    %c0_6 = arith.constant 0 : index
    %6 = vector.load %arg4[%c0_5, %c0_6] : memref<8x256xf32, #tpu.memory_space<vmem>>, vector<8x256xf32>
    tpu.vector_store %arg4[%c0_5, %c0_6], %5 {strides = array<i32>} : memref<8x256xf32, #tpu.memory_space<vmem>>, vector<8x256xf32>,
    return
  }
  func.func @transform_0(%arg0: i32) -> (i32, i32) {
    %c0_i32 = arith.constant 0 : i32
    %c0_i32_0 = arith.constant 0 : i32
    %c0_i32_1 = arith.constant 0 : i32
    return %c0_i32, %c0_i32_0 : i32, i32
  }
  func.func @transform_1(%arg0: i32) -> (i32, i32) {
    %c0_i32 = arith.constant 0 : i32
    %c0_i32_0 = arith.constant 0 : i32
    return %c0_i32, %arg0 : i32, i32
  }
  func.func @transform_2(%arg0: i32) -> (i32, i32) {
    %c0_i32 = arith.constant 0 : i32
    %c0_i32_0 = arith.constant 0 : i32
    return %c0_i32, %arg0 : i32, i32
  }
  func.func @transform_3(%arg0: i32) -> (i32, i32) {
    %c0_i32 = arith.constant 0 : i32
    %c0_i32_0 = arith.constant 0 : i32
    return %c0_i32, %arg0 : i32, i32
  }
}

</mosaic_0001>

<bundles_post_ra>
// kernel: tpu_custom_call.1
= control target key start
LH: loop header
LB: loop body
LE: loop exit
PB: predicated region body
PF: predicated region fallthrough
CT: control target
= control target key end

     0   :  { %8 = vsyncpa [#allocation3], 0  ;;  %s1052_s0 = inlined_call_operand.hbm [shape: bf16[8,128], index: 0, kind: input, shape index: {}]   ;;  %s1053_s1 = inlined_call_operand.hbm [shape: bf16[128,512], index: 1, kind: input, shape index: {}]   ;;  %s1054_s2 = inlined_call_operand.hbm [shape: f32[1,512], index: 2, kind: input, shape index: {}]   ;;  %s1055_s3 = inlined_call_operand.hbm [shape: f32[8,512], index: 3, kind: output, shape index: {}]  }
   0x1   :  { %9 = vsyncpa [#allocation6], 0 }
   0x2   :  { %11 = vsyncpa [#allocation6 + $0x1], 0 }
   0x3   :  { %12 = vsyncpa [#allocation4], 0 }
   0x4   :  { %14 = vsyncpa [#allocation4 + $0x1], 0  ;;  %s819_s12 = smov 0   ;;  %s821_s13 = smov 0  }
   0x5   :  { %s823_s14 = smov 0   ;;  %s825_s15 = smov 0  }
   0x6 LB: > { %s840_s16 = sadd.s32 1, %s789_s15   ;;  %s48_s17 = sadd.s32 1, %s785_s14  ;;  %s789_s15 = sphi %s825_s15, %s1075_s15   ;;  %s785_s14 = sphi %s823_s14, %s1074_s14   ;;  %s781_s13 = sphi %s821_s13, %s1073_s13   ;;  %s777_s12 = sphi %s819_s12, %s1072_s12  }
   0x7   : > { %s45_s18 = ssub.s32 %s789_s15, %s840_s16  ;;  %p55_p0 = scmp.ne.s32.totalorder %s785_s14, %s781_s13 }
   0x8   : > { %p46_p1 = scmp.eq.s32.totalorder %s45_s18, 0  ;;  %p56_p2 = scmp.eq.s32.totalorder %s789_s15, 0 }
   0x9   : > { %p575_p4 = scmp.lt.s32.totalorder %s789_s15, 2  ;;  %s148_s20 = sand.u32 1, %s789_s15  }
   0xa   : > { %s851_s19 = scalar_select %p46_p1, %s785_s14, %s48_s17  }
   0xb   : > { %p57_p5 = por %p56_p2, %p55_p0  ;;  %s150_s21 = sand.u32 1, %s785_s14  }
   0xc   : > { %s514_s22 = sshll.u32 %s150_s21, 7  ;;  %s546_s23 = sshll.u32 %s789_s15, 7 }
   0xd   : > { %s864_s26 = scalar_lea.hbm %s1053_s1, %s546_s23  ;;  %s152_s27 = scalar_lea.vmem [#allocation5], %s514_s22 }
   0xe   : > { %s159_s28 = sshll.u32 %s152_s27, 4  ;;  %p866_p6 = pnand %p575_p4, %p57_p5  ;;  %s870_s28 = int_to_ptr.vmem [resolvable:$true] %s159_s28 }
   0xf   : > { %s872_s30 = scalar_lea.sflag [#allocation6], %s148_s20  ;;  %s639_s4 = scalar_lea.hbm %s864_s26, 2048 }
  0x10   : > { %p640_p7 = scmp.ne.s32.totalorder %s864_s26, %s639_s4  ;;  %p1056_p8 = pneg %p866_p6 }
  0x11   : > { %s644_s7 = scalar_lea.hbm %s1053_s1, 4096  ;;  %p645_p11 = scmp.lt.s32.totalorder %s864_s26, %s1053_s1 }
  0x12   : > { %p642_p9 = pnand %p1056_p8, %p640_p7  ;;  %p646_p12 = scmp.lt.s32.totalorder %s644_s7, %s639_s4 }
  0x14   : > { %p643_p10 = pneg %p642_p9  ;;  %p647_p13 = por %p646_p12, %p645_p11 }
  0x16   : > { %p648_p1 = pnand %p647_p13, %p643_p10 }
  0x18   : > { %651 = shalt.err (!%p648_p1)
}
  0x19   : > { %s652_s10 = scalar_lea.vmem %s870_s28, 2048  ;;  %s791_s11 = smov [#allocation5]  }
  0x1a   : > { %p653_p2 = scmp.ne.s32.totalorder %s870_s28, %s652_s10  ;;  %s657_s17 = sshll.u32 %s791_s11, 4  ;;  %s658_s17 = int_to_ptr.vmem [resolvable:$false] %s657_s17 }
  0x1b   : > { %s659_s18 = scalar_lea.vmem %s658_s17, 4096  ;;  %p660_p7 = scmp.lt.s32.totalorder %s870_s28, %s658_s17 }
  0x1c   : > { %p655_p4 = pnand %p653_p2, %p1056_p8  ;;  %p661_p9 = scmp.lt.s32.totalorder %s659_s18, %s652_s10 }
  0x1e   : > { %p656_p5 = pneg %p655_p4  ;;  %p662_p3 = por %p661_p9, %p660_p7 }
  0x20   : > { %p663_p11 = pnand %p662_p3, %p656_p5 }
  0x22   : > { %666 = shalt.err (!%p663_p11)
}
  0x23   : > { %s792_s20 = smov 256   ;;  %s793_s22 = smov 128  }
  0x24   : > { %s794_s23 = smov 8   ;;  %s900_s24 = sadd.s32 4294967295, %s789_s15  }
  0x25   : > { %566 = dma.hbm_to_vmem [thread:$0]  (!%p866_p6), %s864_s26, 2048, %s870_s28, %s872_s30, %s792_s20, %s793_s22, %s794_s23  }
  0x26   : > { %s510_s25 = sadd.s32 4294967294, %s789_s15   ;;  %p61_p3 = scmp.ne.s32.totalorder %s781_s13, %s777_s12 }
  0x27   : > { %p1058_p10 = scmp.eq.s32.totalorder %s900_s24, 0  ;;  %p111_p12 = scmp.eq.s32.totalorder %s900_s24, 1 }
  0x28   : > { %p117_p13 = scmp.eq.s32.totalorder %s510_s25, 1  ;;  %p511_p1 = scmp.ge.s32.totalorder %s789_s15, 1 }
  0x29   : > { %p910_p2 = por %p1058_p10, %p61_p3  ;;  %p917_p4 = por %p111_p12, %p55_p0 }
  0x2a   : > { %p921_p5 = por %p117_p13, %p61_p3  ;;  %p124_p7 = scmp.lt.s32.totalorder %s789_s15, 3 }
  0x2b   : > { %s1061_s27 = scalar_select %p910_p2, 1, 0 }
  0x2c   : > { %s1062_s26 = scalar_select %p917_p4, 1, 0 }
  0x2d   : > { %s1063_s28 = scalar_select %p921_p5, 1, 0 }
  0x2e   : > { %p926_p9 = pnand %p511_p1, %p124_p7  ;;  %s795_s5 = smov [#allocation2]  }
  0x2f   : > { %s137_s6 = sshll.u32 %s795_s5, 4  ;;  %s517_s7 = sshll.u32 %s150_s21, 1  ;;  %s138_s6 = int_to_ptr.vmem [resolvable:$true] %s137_s6 }
  0x30   : > { %p559_p11 = pneg %p926_p9  ;;  %s547_s8 = sshll.u32 %s789_s15, 5 }
  0x31   : > { %s173_s9 = scalar_lea.vmem [#allocation7], %s517_s7  ;;  %s940_s18 = scalar_lea.hbm %s1054_s2, %s547_s8 }
  0x32   : > { %s181_s10 = sshll.u32 %s173_s9, 4  ;;  %p560_p0 = pnand %p559_p11, %p1058_p10  ;;  %s942_s10 = int_to_ptr.vmem [resolvable:$true] %s181_s10 }
  0x33   : > { %s678_s20 = scalar_lea.vmem %s138_s6, 64  ;;  %p686_p7 = scmp.lt.s32.totalorder %s138_s6, %s138_s6 }
  0x34   : > { %p669_p3 = pneg %p560_p0  ;;  %p679_p12 = scmp.ne.s32.totalorder %s138_s6, %s678_s20 }
  0x35   : > { %p687_p8 = scmp.lt.s32.totalorder %s678_s20, %s678_s20 }
  0x36   : > { %p681_p13 = pnand %p679_p12, %p669_p3 }
  0x37   : > { %p688_p5 = por %p687_p8, %p686_p7 }
  0x38   : > { %p682_p1 = pneg %p681_p13 }
  0x3a   : > { %p689_p4 = pnand %p688_p5, %p682_p1 }
  0x3c   : > { %692 = shalt.err (!%p689_p4)
}
  0x3d   : > { %562 = dma.hbm_to_vmem [thread:$0]  (!%p560_p0), %s1052_s0, 64, %s138_s6, [#allocation3]  }
  0x3e   : > { %s693_s23 = scalar_lea.hbm %s940_s18, 32  ;;  %p1065_p10 = pneg %p866_p6 }
  0x3f   : > { %p694_p11 = scmp.ne.s32.totalorder %s940_s18, %s693_s23  ;;  %s698_s7 = scalar_lea.hbm %s1054_s2, 64 }
  0x40   : > { %p699_p8 = scmp.lt.s32.totalorder %s940_s18, %s1054_s2  ;;  %p700_p4 = scmp.lt.s32.totalorder %s698_s7, %s693_s23 }
  0x41   : > { %p696_p2 = pnand %p694_p11, %p1065_p10 }
  0x42   : > { %p701_p5 = por %p700_p4, %p699_p8 }
  0x43   : > { %p697_p3 = pneg %p696_p2 }
  0x45   : > { %p702_p12 = pnand %p701_p5, %p697_p3 }
  0x47   : > { %705 = shalt.err (!%p702_p12)
}
  0x48   : > { %s706_s6 = scalar_lea.vmem %s942_s10, 32  ;;  %s796_s11 = smov [#allocation7]  }
  0x49   : > { %p707_p0 = scmp.ne.s32.totalorder %s942_s10, %s706_s6  ;;  %s711_s17 = sshll.u32 %s796_s11, 4  ;;  %s712_s17 = int_to_ptr.vmem [resolvable:$false] %s711_s17 }
  0x4a   : > { %s713_s20 = scalar_lea.vmem %s712_s17, 64  ;;  %p714_p1 = scmp.lt.s32.totalorder %s942_s10, %s712_s17 }
  0x4b   : > { %p709_p2 = pnand %p707_p0, %p1065_p10  ;;  %p715_p7 = scmp.lt.s32.totalorder %s713_s20, %s706_s6 }
  0x4d   : > { %p710_p13 = pneg %p709_p2  ;;  %p716_p11 = por %p715_p7, %p714_p1 }
  0x4f   : > { %p717_p8 = pnand %p716_p11, %p710_p13 }
  0x51   : > { %720 = shalt.err (!%p717_p8)
}
  0x52   : > { %569 = dma.hbm_to_vmem [thread:$0]  (!%p866_p6), %s940_s18, 32, %s942_s10, %s872_s30  }
  0x53   : > { %190 = sbr.rel (%p926_p9) target bundleno = 338 (0x152), region = 32  ;;  %p1066_p3 = scmp.eq.s32.totalorder (!%p926_p9), %s900_s24, 0 }
  0x58   : > { %764 = dma.done.wait (%p1066_p3), [#allocation3], 64   ;;  %p1067_p4 = pmov %p1066_p3 }
  0x59   : > { %s196_s21 = sand.u32 1, %s900_s24   ;;  %s978_s22 = sand.u32 1, %s781_s13  }
  0x5a   : > { %766 = vsyncadd (%p1067_p4), [#allocation3], 4294967232  ;;  %s522_s29 = sshll.u32 %s978_s22, 7  ;;  %s197_s23 = scalar_lea.sflag [#allocation6], %s196_s21 }
  0x5b   : > { %s981_s25 = scalar_lea.vmem [#allocation5], %s522_s29  ;;  %p1068_p6 = scmp.ne.s32.totalorder %s1061_s27, 0 }
  0x5d   : > { %768 = dma.done.wait (%p1068_p6), %s197_s23, 2080  }
  0x5e   : > { %770 = vsyncadd (%p1068_p6), %s197_s23, 4294965216  ;;  %v797_v0 = vmov 0   ;;  %v615_v1 = vld [vmem:[%s981_s25 + $0x74] ss:$8 sps:$4 sm:$0xff]   ;;  %v617_v2 = vld [vmem:[%s981_s25 + $0x70] ss:$8 sps:$4 sm:$0xff]   ;;  %v260_v18 = vlaneseq }
  0x5f   : > { %382 = vmatprep.mubr.bf16.mxu0 %v797_v0  ;;  %350 = vmatprep.subr.bf16.mxu0 %v615_v1  ;;  %v618_v3 = vld [vmem:[%s981_s25 + $0x64] ss:$8 sps:$4 sm:$0xff]   ;;  %v620_v4 = vld [vmem:[%s981_s25 + $0x60] ss:$8 sps:$4 sm:$0xff]   ;;  %v621_v5 = vld [vmem:[%s981_s25 + $0x54] ss:$8 sps:$4 sm:$0xff]  }
  0x60   : > { %351 = vmatpush1.bf16.msra.mxu0 %v617_v2  ;;  %v623_v6 = vld [vmem:[%s981_s25 + $0x50] ss:$8 sps:$4 sm:$0xff]   ;;  %v624_v7 = vld [vmem:[%s981_s25 + $0x44] ss:$8 sps:$4 sm:$0xff]   ;;  %v626_v8 = vld [vmem:[%s981_s25 + $0x40] ss:$8 sps:$4 sm:$0xff]  }
  0x61   : > { %352 = vmatprep.subr.bf16.mxu0 %v618_v3  ;;  %v627_v9 = vld [vmem:[%s981_s25 + $0x34] ss:$8 sps:$4 sm:$0xff]   ;;  %v629_v10 = vld [vmem:[%s981_s25 + $0x30] ss:$8 sps:$4 sm:$0xff]   ;;  %v630_v11 = vld [vmem:[%s981_s25 + $0x24] ss:$8 sps:$4 sm:$0xff]  }
  0x62   : > { %v632_v12 = vld [vmem:[%s981_s25 + $0x20] ss:$8 sps:$4 sm:$0xff]   ;;  %v633_v13 = vld [vmem:[%s981_s25 + $0x14] ss:$8 sps:$4 sm:$0xff]   ;;  %v635_v14 = vld [vmem:[%s981_s25 + $0x10] ss:$8 sps:$4 sm:$0xff]  }
  0x63   : > { %v636_v15 = vld [vmem:[%s981_s25 + $0x4] ss:$8 sps:$4 sm:$0xff]   ;;  %v638_v16 = vld [vmem:[%s981_s25] ss:$8 sps:$4 sm:$0xff]   ;;  %v241_v17 = vld [vmem:[#allocation2] sm:$0xf] }
  0x64   : > { %353 = vmatpush1.bf16.msra.mxu0 %v620_v4  ;;  %s523_s30 = sshll.u32 %s978_s22, 1  ;;  %v261_v19 = vshrl.u32 %v260_v18, 7  ;;  %s524_s27 = sshll.u32 %s978_s22, 4 }
  0x65   : > { %354 = vmatprep.subr.bf16.mxu0 %v621_v5  ;;  %s209_s4 = scalar_lea.vmem [#allocation7], %s523_s30  ;;  %s548_s10 = sshll.u32 %s900_s24, 8 }
  0x66   : > { %v262_v20 = vsub.s32 0, %v261_v19  ;;  %v258_v21 = vld [vmem:[%s209_s4] sm:$0x3]  ;;  %v266_v22 = vsub.s32 1, %v261_v19  ;;  %s236_s18 = scalar_lea.vmem [#allocation8], %s524_s27  ;;  %s1009_s9 = scalar_lea.hbm %s1055_s3, %s548_s10 }
  0x67   : > { %s408_s5 = sshll.u32 %s236_s18, 4  ;;  %s394_s24 = scalar_lea.sflag [#allocation4], %s978_s22  ;;  %s1011_s5 = int_to_ptr.vmem [resolvable:$true] %s408_s5 }
  0x68   : > { %355 = vmatpush1.bf16.msra.mxu0 %v623_v6  ;;  %v263_v23 = vrot.slane %v258_v21, %v262_v20  ;;  %v267_v24 = vrot.slane %v258_v21, %v266_v22  ;;  %s721_s6 = scalar_lea.vmem %s1011_s5, 256  ;;  %p1069_p5 = scmp.ne.s32.totalorder %s1062_s26, 0 }
  0x69   : > { %356 = vmatprep.subr.bf16.mxu0 %v624_v7  ;;  %p722_p9 = scmp.ne.s32.totalorder %s1011_s5, %s721_s6  ;;  %s798_s11 = smov [#allocation8]  }
  0x6a   : > { %s725_s17 = sshll.u32 %s798_s11, 4  ;;  %s726_s17 = int_to_ptr.vmem [resolvable:$false] %s725_s17 }
  0x6b   : > { %p723_p12 = pnand %p722_p9, %p1069_p5  ;;  %s727_s20 = scalar_lea.vmem %s726_s17, 512 }
  0x6c   : > { %357 = vmatpush1.bf16.msra.mxu0 %v626_v8  ;;  %p728_p10 = scmp.lt.s32.totalorder %s1011_s5, %s726_s17  ;;  %p729_p2 = scmp.lt.s32.totalorder %s727_s20, %s721_s6 }
  0x6d   : > { %358 = vmatprep.subr.bf16.mxu0 %v627_v9  ;;  %p724_p0 = pneg %p723_p12 }
  0x6e   : > { %p730_p13 = por %p729_p2, %p728_p10 }
  0x70   : > { %359 = vmatpush1.bf16.msra.mxu0 %v629_v10  ;;  %p731_p1 = pnand %p730_p13, %p724_p0 }
  0x71   : > { %360 = vmatprep.subr.bf16.mxu0 %v630_v11 }
  0x74   : > { %361 = vmatpush1.bf16.msra.mxu0 %v632_v12 }
  0x75   : > { %362 = vmatprep.subr.bf16.mxu0 %v633_v13 }
  0x78   : > { %363 = vmatpush1.bf16.msra.mxu0 %v635_v14 }
  0x79   : > { %364 = vmatprep.subr.bf16.mxu0 %v636_v15 }
  0x7c   : > { %365 = vmatpush1.bf16.msra.mxu0 %v638_v16 }
  0x7f   : > { %383 = vmatmul.mubr.bf16.vlgmr.msra.gmra.mxu0 %v241_v17 }
 0x13f   : > { %v384_v25 = vpop.f32.mrf.mxu0 }
 0x140   : > { %v385_v26 = vadd.f32 %v384_v25, %v263_v23 }
 0x141   : > { %v386_v27 = vpop.f32.mrf.mxu0 }
 0x142   : > { %391 = vst [vmem:[%s236_s18] sm:$0xff] %v385_v26  ;;  %v387_v28 = vadd.f32 %v386_v27, %v267_v24 }
 0x143   : > { %v388_v29 = vpop.f32.mrf.mxu0 }
 0x144   : > { %392 = vst [vmem:[%s236_s18 + $0x8] sm:$0xff] %v387_v28 }
 0x145   : > { %v389_v30 = vpop.f32.mrf.mxu0 }
 0x146   : > { %734 = shalt.err (!%p731_p1)
}
 0x147   : > { %s735_s21 = scalar_lea.hbm %s1009_s9, 256  ;;  %s739_s23 = scalar_lea.hbm %s1055_s3, 512 }
 0x148   : > { %p736_p7 = scmp.ne.s32.totalorder %s1009_s9, %s735_s21  ;;  %p740_p3 = scmp.lt.s32.totalorder %s1009_s9, %s1055_s3 }
 0x149   : > { %p741_p4 = scmp.lt.s32.totalorder %s739_s23, %s735_s21 }
 0x14a   : > { %p737_p11 = pnand %p736_p7, %p1069_p5 }
 0x14b   : > { %p742_p6 = por %p741_p4, %p740_p3 }
 0x14c   : > { %p738_p8 = pneg %p737_p11 }
 0x14e   : > { %p743_p9 = pnand %p742_p6, %p738_p8 }
 0x150   : > { %746 = shalt.err (!%p743_p9)
}
 0x151   : > { %557 = dma.vmem_to_hbm [thread:$0]  (%p1069_p5), %s1011_s5, 256, %s1009_s9, %s394_s24  }
 0x152 PF: > { %s420_s27 = sand.u32 1, %s777_s12   ;;  %p1070_p12 = scmp.ne.s32.totalorder %s1063_s28, 0 }
 0x153   : > { %p1071_p0 = scmp.ge.s32.totalorder %s789_s15, 2  ;;  %s421_s4 = scalar_lea.sflag [#allocation4], %s420_s27 }
 0x155   : > { %p571_p10 = pnand %p1071_p0, %p1070_p12 }
 0x157   : > { %p572_p2 = pneg %p571_p10 }
 0x159   : > { %772 = dma.done.wait (%p572_p2), %s421_s4, 256  }
 0x15a   : > { %774 = vsyncadd (%p572_p2), %s421_s4, 4294967040  ;;  %p17_p13 = scmp.ge.s32.totalorder %s840_s16, 4   ;;  %s1072_s12 = smov %s781_s13 }
 0x15b   : > { %s1073_s13 = smov %s785_s14  ;;  %s1074_s14 = smov %s851_s19 }
 0x15c   : > { %s1075_s15 = smov %s840_s16  ;;  %19 = sbr.rel (!%p17_p13) target bundleno = 6 (0x6), region = 93 }
 0x161   :  { %426 = vsyncpa [#allocation3], 1 }
 0x162   :  { %428 = vsyncpa [#allocation3 + $0x1], 1 }
 0x163   :  { %429 = vsyncpa [#allocation6], 1 }
 0x164   :  { %431 = vsyncpa [#allocation6 + $0x1], 1 }
 0x165   :  { %432 = vsyncpa [#allocation4], 1 }
 0x166   :  { %434 = vsyncpa [#allocation4 + $0x1], 1 }

</bundles_post_ra>
